<compile_context>
chip_gen: v7x
topology: tpu7x:2x2x1
jax: 0.10.0
libtpu: 0.0.40
codegen_flags: <defaults>
</compile_context>

<pallas_src>
import functools

import jax
import jax.numpy as jnp
from jax.experimental import pallas as pl
from jax.experimental.pallas import tpu as pltpu


def _mlp_kernel(x_ref, w1_ref, b1_ref, w2_ref, b2_ref, o_ref):
    # Fused (x @ W1 + b1) -> ReLU -> (@ W2 + b2) on the current batch tile.
    x = x_ref[...]
    h = jnp.dot(x, w1_ref[...], preferred_element_type=jnp.float32)       # MXU, f32 acc
    h = jnp.maximum(h + b1_ref[...].astype(jnp.float32), 0.0)             # VPU, f32
    y = jnp.dot(h.astype(w2_ref.dtype), w2_ref[...],
                preferred_element_type=jnp.float32)                        # MXU, f32 acc
    y = y + b2_ref[...].astype(jnp.float32)
    o_ref[...] = y.astype(o_ref.dtype)


def _round_up(x, m):
    return ((x + m - 1) // m) * m


def _cdiv(a, b):
    return (a + b - 1) // b


@functools.lru_cache(maxsize=1)
def _vmem_budget_bytes():
    """Generation-aware VMEM budget (one-time capability check, never a per-call retry)."""
    try:
        cap = int(pltpu.get_tpu_info().vmem_capacity_bytes)
    except Exception:
        cap = 0
    if cap <= 0:
        cap = 64 << 20  # conservative default = v7x per-core VMEM
    # ~75% of the core's VMEM, never more than 100 MiB (leaves compiler scratch headroom).
    return min(cap * 3 // 4, 100 << 20)


def _pick_tm(B, d_in, d_hid, d_out, x_itemsize, w_itemsize, budget):
    """Largest batch tile fitting the VMEM budget; >=2 tiles for mid/large batches."""
    # Resident weights/biases, x2 (default double-buffering even for constant blocks).
    w_bytes = 2 * (d_in * d_hid + d_hid * d_out + d_hid + d_out) * w_itemsize
    # Per-row bytes: double-buffered x and out tiles + f32 intermediates h and y.
    per_row = 2 * (d_in + d_out) * x_itemsize + 4 * (d_hid + d_out)
    avail = max(budget - w_bytes, budget // 8)
    tm_vmem = max(8, (avail // max(per_row, 1)) // 8 * 8)
    tm_cap = min(2048, tm_vmem)

    b8 = _round_up(max(B, 1), 8)
    if b8 <= 256:                         # small batch: single grid step
        return min(b8, tm_cap)
    # Mid/large batch: at least two tiles so both TensorCores (megacore / v7x) get work.
    half = _round_up(_cdiv(b8, 2), 128)
    tm = min(half, tm_cap)
    if tm >= 128:
        tm = (tm // 128) * 128
    return max(8, tm)


@functools.partial(jax.jit, static_argnames=("tm",))
def attention_mlp(x, w1, b1, w2, b2, *, tm=None):
    """HeroLT Attention.forward as one fused Pallas kernel.

    x : (B, D_in); w1: (D_in, D_hid); b1: (1, D_hid); w2: (D_hid, D_out); b2: (1, D_out).
    """
    B, D_in = x.shape
    D_hid = w1.shape[1]
    D_out = w2.shape[1]
    x_itemsize = jnp.dtype(x.dtype).itemsize
    w_itemsize = jnp.dtype(w1.dtype).itemsize

    budget = _vmem_budget_bytes()
    if tm is None:
        tm = _pick_tm(B, D_in, D_hid, D_out, x_itemsize, w_itemsize, budget)
    tm = max(8, _round_up(int(tm), 8))
    B_p = _round_up(B, tm)

    # Ragged batch -> zero-pad rows only (no feature-axis padding anywhere).
    x_p = x if B_p == B else jnp.pad(x, ((0, B_p - B), (0, 0)))

    # Honest VMEM accounting: 2x-buffered weights + double-buffered row tiles + f32 temps.
    w_bytes = 2 * (D_in * D_hid + D_hid * D_out + D_hid + D_out) * w_itemsize
    tile_bytes = tm * (2 * (D_in + D_out) * x_itemsize + 4 * (D_hid + D_out))
    need = w_bytes + tile_bytes + (2 << 20)
    vmem_limit = int(min(max(2 * need, 32 << 20), budget))

    out_p = pl.pallas_call(
        _mlp_kernel,
        out_shape=jax.ShapeDtypeStruct((B_p, D_out), x.dtype),
        grid=(B_p // tm,),
        in_specs=[
            pl.BlockSpec((tm, D_in), lambda i: (i, 0)),       # x row tile (full D_in)
            pl.BlockSpec((D_in, D_hid), lambda i: (0, 0)),    # W1 resident
            pl.BlockSpec((1, D_hid), lambda i: (0, 0)),       # b1 resident
            pl.BlockSpec((D_hid, D_out), lambda i: (0, 0)),   # W2 resident
            pl.BlockSpec((1, D_out), lambda i: (0, 0)),       # b2 resident
        ],
        out_specs=pl.BlockSpec((tm, D_out), lambda i: (i, 0)),   # full D_out, no padding
        compiler_params=pltpu.CompilerParams(
            # Batch tiles are independent -> megacore sharding where available.
            # TODO(synk): pltpu.CORE_PARALLEL on v7x for guaranteed cross-TC split.
            dimension_semantics=("parallel",),
            vmem_limit_bytes=vmem_limit,
        ),
    )(x_p, w1, b1, w2, b2)

    return out_p if B_p == B else out_p[:B]


def init_params(key, input_dim, output_dim, dtype=jnp.float32):
    """Deterministic PyTorch-style (uniform +/- 1/sqrt(fan_in)) init."""
    hidden = input_dim // 2
    k1, k2, k3, k4 = jax.random.split(key, 4)
    bound1 = 1.0 / (input_dim ** 0.5)
    bound2 = 1.0 / (hidden ** 0.5)
    w1 = jax.random.uniform(k1, (input_dim, hidden), dtype, -bound1, bound1)
    b1 = jax.random.uniform(k2, (1, hidden), dtype, -bound1, bound1)
    w2 = jax.random.uniform(k3, (hidden, output_dim), dtype, -bound2, bound2)
    b2 = jax.random.uniform(k4, (1, output_dim), dtype, -bound2, bound2)
    return w1, b1, w2, b2


def _ref_mlp(x, w1, b1, w2, b2):
    return jnp.maximum(x @ w1 + b1, 0.0) @ w2 + b2


if __name__ == "__main__":
    key = jax.random.PRNGKey(0)
    kx, kp, kx2 = jax.random.split(key, 3)

    # Small shapes matching the module: Linear(32 -> 16) -> ReLU -> Linear(16 -> 8).
    batch, input_dim, output_dim = 16, 32, 8
    x = jax.random.normal(kx, (batch, input_dim), jnp.float32)
    w1, b1, w2, b2 = init_params(kp, input_dim, output_dim)

    out = jax.block_until_ready(attention_mlp(x, w1, b1, w2, b2))
    ref = _ref_mlp(x, w1, b1, w2, b2)
    assert out.shape == (batch, output_dim)
    assert jnp.allclose(out, ref, atol=1e-5, rtol=1e-5)

    # Larger batch exercising the multi-tile path (grid >= 2, parallel batch tiles).
    batch2 = 1024
    x2 = jax.random.normal(kx2, (batch2, input_dim), jnp.float32)
    out2 = jax.block_until_ready(attention_mlp(x2, w1, b1, w2, b2))
    ref2 = _ref_mlp(x2, w1, b1, w2, b2)
    assert out2.shape == (batch2, output_dim)
    assert jnp.allclose(out2, ref2, atol=1e-5, rtol=1e-5)

    # Ragged batch exercising the row-padding + crop path.
    x3 = x2[:1000]
    out3 = jax.block_until_ready(attention_mlp(x3, w1, b1, w2, b2))
    assert out3.shape == (1000, output_dim)
    assert jnp.allclose(out3, ref2[:1000], atol=1e-5, rtol=1e-5)

    # bf16 fast path (halves HBM read traffic); accumulation stays f32 in-kernel.
    x_bf = x.astype(jnp.bfloat16)
    w1_bf, b1_bf, w2_bf, b2_bf = (p.astype(jnp.bfloat16) for p in (w1, b1, w2, b2))
    out_bf = jax.block_until_ready(attention_mlp(x_bf, w1_bf, b1_bf, w2_bf, b2_bf))
    assert out_bf.shape == (batch, output_dim)
    assert out_bf.dtype == jnp.bfloat16
    assert jnp.allclose(out_bf.astype(jnp.float32), ref, atol=1e-1, rtol=1e-1)

    print("KERNEL_OK")
</pallas_src>

<mosaic_0001>
module attributes {stable_mosaic.version = 11 : i64} {
  func.func @_mlp_kernel(%arg0: i32, %arg1: memref<16x32xf32, #tpu.memory_space<vmem>>, %arg2: memref<32x16xf32, #tpu.memory_space<vmem>>, %arg3: memref<1x16xf32, #tpu.memory_space<vmem>>, %arg4: memref<16x8xf32, #tpu.memory_space<vmem>>, %arg5: memref<1x8xf32, #tpu.memory_space<vmem>>, %arg6: memref<16x8xf32, #tpu.memory_space<vmem>>) attributes {dimension_semantics = [#tpu.dimension_semantics<parallel>], iteration_bounds = array<i64: 1>, scalar_prefetch = 0 : i64, scratch_operands = 0 : i64, tpu.core_type = #tpu.core_type<tc>, window_params = [{transform_indices = @transform_0, window_bounds = array<i64: 16, 32>}, {pipeline_mode = #tpu.pipeline_mode<synchronous>, transform_indices = @transform_1, window_bounds = array<i64: 32, 16>}, {pipeline_mode = #tpu.pipeline_mode<synchronous>, transform_indices = @transform_2, window_bounds = array<i64: 1, 16>}, {pipeline_mode = #tpu.pipeline_mode<synchronous>, transform_indices = @transform_3, window_bounds = array<i64: 16, 8>}, {pipeline_mode = #tpu.pipeline_mode<synchronous>, transform_indices = @transform_4, window_bounds = array<i64: 1, 8>}, {transform_indices = @transform_5, window_bounds = array<i64: 16, 8>}]} {
    %c0 = arith.constant 0 : index
    %c0_0 = arith.constant 0 : index
    %0 = vector.load %arg1[%c0, %c0_0] : memref<16x32xf32, #tpu.memory_space<vmem>>, vector<16x32xf32>
    %c0_1 = arith.constant 0 : index
    %c0_2 = arith.constant 0 : index
    %1 = vector.load %arg2[%c0_1, %c0_2] : memref<32x16xf32, #tpu.memory_space<vmem>>, vector<32x16xf32>
    %cst = arith.constant dense<0.000000e+00> : vector<16x16xf32>
    %2 = tpu.matmul %0, %1, %cst {dimension_numbers = #tpu.dot_dimension_numbers<[1], [0], [0], [1], [0, 0, 1, 1], [], []>} : vector<16x32xf32>, vector<32x16xf32>, vector<16x16xf32> -> vector<16x16xf32>
    %c0_3 = arith.constant 0 : index
    %c0_4 = arith.constant 0 : index
    %3 = vector.load %arg3[%c0_3, %c0_4] : memref<1x16xf32, #tpu.memory_space<vmem>>, vector<1x16xf32>
    %4 = vector.broadcast %3 : vector<1x16xf32> to vector<16x16xf32>
    %5 = arith.addf %2, %4 : vector<16x16xf32>
    %cst_5 = arith.constant 0.000000e+00 : f32
    %6 = vector.broadcast %cst_5 : f32 to vector<16x16xf32>
    %7 = arith.maximumf %5, %6 : vector<16x16xf32>
    %c0_6 = arith.constant 0 : index
    %c0_7 = arith.constant 0 : index
    %8 = vector.load %arg4[%c0_6, %c0_7] : memref<16x8xf32, #tpu.memory_space<vmem>>, vector<16x8xf32>
    %cst_8 = arith.constant dense<0.000000e+00> : vector<16x8xf32>
    %9 = tpu.matmul %7, %8, %cst_8 {dimension_numbers = #tpu.dot_dimension_numbers<[1], [0], [0], [1], [0, 0, 1, 1], [], []>} : vector<16x16xf32>, vector<16x8xf32>, vector<16x8xf32> -> vector<16x8xf32>
    %c0_9 = arith.constant 0 : index
    %c0_10 = arith.constant 0 : index
    %10 = vector.load %arg5[%c0_9, %c0_10] : memref<1x8xf32, #tpu.memory_space<vmem>>, vector<1x8xf32>
    %11 = vector.broadcast %10 : vector<1x8xf32> to vector<16x8xf32>
    %12 = arith.addf %9, %11 : vector<16x8xf32>
    %c0_11 = arith.constant 0 : index
    %c0_12 = arith.constant 0 : index
    %13 = vector.load %arg6[%c0_11, %c0_12] : memref<16x8xf32, #tpu.memory_space<vmem>>, vector<16x8xf32>
    tpu.vector_store %arg6[%c0_11, %c0_12], %12 {strides = array<i32>} : memref<16x8xf32, #tpu.memory_space<vmem>>, vector<16x8xf32>,
    return
  }
  func.func @transform_0(%arg0: i32) -> (i32, i32) {
    %c0_i32 = arith.constant 0 : i32
    %c0_i32_0 = arith.constant 0 : i32
    return %arg0, %c0_i32 : i32, i32
  }
  func.func @transform_1(%arg0: i32) -> (i32, i32) {
    %c0_i32 = arith.constant 0 : i32
    %c0_i32_0 = arith.constant 0 : i32
    %c0_i32_1 = arith.constant 0 : i32
    return %c0_i32, %c0_i32_0 : i32, i32
  }
  func.func @transform_2(%arg0: i32) -> (i32, i32) {
    %c0_i32 = arith.constant 0 : i32
    %c0_i32_0 = arith.constant 0 : i32
    %c0_i32_1 = arith.constant 0 : i32
    return %c0_i32, %c0_i32_0 : i32, i32
  }
  func.func @transform_3(%arg0: i32) -> (i32, i32) {
    %c0_i32 = arith.constant 0 : i32
    %c0_i32_0 = arith.constant 0 : i32
    %c0_i32_1 = arith.constant 0 : i32
    return %c0_i32, %c0_i32_0 : i32, i32
  }
  func.func @transform_4(%arg0: i32) -> (i32, i32) {
    %c0_i32 = arith.constant 0 : i32
    %c0_i32_0 = arith.constant 0 : i32
    %c0_i32_1 = arith.constant 0 : i32
    return %c0_i32, %c0_i32_0 : i32, i32
  }
  func.func @transform_5(%arg0: i32) -> (i32, i32) {
    %c0_i32 = arith.constant 0 : i32
    %c0_i32_0 = arith.constant 0 : i32
    return %arg0, %c0_i32 : i32, i32
  }
}

</mosaic_0001>

<bundles_post_ra>
// kernel: attention_mlp.1
= control target key start
LH: loop header
LB: loop body
LE: loop exit
PB: predicated region body
PF: predicated region fallthrough
CT: control target
= control target key end

     0   :  { %vm33_vm0 = vcmask 261120   ;;  %vm126_vm1 = vcmask 130048   ;;  %vm208_vm2 = vcmask 64512   ;;  %s327_s1 = inlined_call_operand.vmem [shape: f32[32,16], index: 1, kind: input, shape index: {}]   ;;  %s328_s0 = inlined_call_operand.vmem [shape: f32[16,32], index: 0, kind: input, shape index: {}]   ;;  %s329_s3 = inlined_call_operand.vmem [shape: f32[16,8], index: 3, kind: input, shape index: {}]   ;;  %s330_s2 = inlined_call_operand.vmem [shape: f32[1,16], index: 2, kind: input, shape index: {}]   ;;  %s331_s4 = inlined_call_operand.vmem [shape: f32[1,8], index: 4, kind: input, shape index: {}]   ;;  %s332_s5 = inlined_call_operand.vmem [shape: f32[16,8], index: 5, kind: output, shape index: {}]  }
   0x1   :  { %v22_v0 = vld [vmem:[%s327_s1] sm:$0xff]  ;;  %v23_v1 = vld [vmem:[%s327_s1 + $0x8] sm:$0xff]  ;;  %v24_v2 = vld [vmem:[%s327_s1 + $0x10] sm:$0xff] }
   0x2   :  { %v249_v3 = vpack.c.bf16 %v23_v1, %v22_v0  ;;  %v25_v4 = vld [vmem:[%s327_s1 + $0x18] sm:$0xff]  ;;  %v20_v5 = vld [vmem:[%s328_s0] sm:$0xff]  ;;  %v21_v7 = vld [vmem:[%s328_s0 + $0x8] sm:$0xff] }
   0x3   :  { %v253_v6 = vpack.c.bf16 %v25_v4, %v24_v2  ;;  %239 = vmatprep.mubr.msk.f32.mxu0 %vm33_vm0, %v20_v5  ;;  %v117_v8 = vld [vmem:[%s329_s3] sm:$0xff]  ;;  %v118_v9 = vld [vmem:[%s329_s3 + $0x8] sm:$0xff] }
   0x4   :  { %250 = vmatprep.subr.bf16.mxu0 %v249_v3  ;;  %v257_v10 = vpack.c.bf16 %v118_v9, %v117_v8  ;;  %v215_v11 = vld [vmem:[%s330_s2] ss:$0 sm:$0xff] }
   0x5   :  { %252 = vmatpush3.bf16.msra.mxu0 %v249_v3  ;;  %v218_v18 = vld [vmem:[%s331_s4] ss:$0 sm:$0xff] }
   0x6   :  { %254 = vmatprep.subr.bf16.mxu0 %v253_v6  ;;  %258 = vmatprep.subr.bf16.mxu1 %v257_v10 }
   0x7   :  { %260 = vmatpush3.bf16.msra.mxu1 %v257_v10 }
   0x9   :  { %256 = vmatpush3.bf16.msra.mxu0 %v253_v6 }
   0xc   :  { %240 = vmatmul.mubr.msk.f32.vlgmr.msra.gmra.mrb[0].mxu0 %vm33_vm0, %v21_v7 }
  0xdf   :  { %v241_v12 = vpop.f32.mrb[0].mxu0 }
  0xe0   :  { %v112_v13 = vadd.f32 %v241_v12, %v215_v11  ;;  %v106_v14 = vpop.f32.mrb[1].mxu0 }
  0xe1   :  { %v107_v15 = vadd.f32 %v215_v11, %v106_v14 }
  0xe2   :  { %v116_v17 = vmax.f32 %v112_v13, 0.0 }
  0xe3   :  { %v115_v16 = vmax.f32 %v107_v15, 0.0 }
  0xe5   :  { %246 = vmatprep.mubr.msk.f32.mxu1 %vm126_vm1, %v115_v16 }
  0xe6   :  { %247 = vmatmul.mubr.msk.f32.vlgmr.msra.gmra.mrb[0].mxu1 %vm126_vm1, %v116_v17 }
 0x1b9   :  { %v248_v19 = vpop.f32.mrb[0].mxu1 }
 0x1ba   :  { %v205_v20 = vadd.f32 %v248_v19, %v218_v18  ;;  %v199_v21 = vpop.f32.mrb[1].mxu1 }
 0x1bb   :  { %v200_v22 = vadd.f32 %v218_v18, %v199_v21 }
 0x1bc   :  { %210 = vst.msk [vmem:[%s332_s5 + $0x8] sm:$0xff] %vm208_vm2, %v205_v20 }
 0x1bd   :  { %209 = vst.msk [vmem:[%s332_s5] sm:$0xff] %vm208_vm2, %v200_v22 }

</bundles_post_ra>
